<compile_context>
chip_gen: v6e
topology: v6e:2x2x1
jax: 0.10.0
libtpu: 0.0.40
codegen_flags: <defaults>
</compile_context>

<pallas_src>
import functools

import jax
import jax.numpy as jnp
from jax.experimental import pallas as pl
from jax.experimental.pallas import tpu as pltpu

LANES = 128          # vreg lane width (last dim)
SUBLANES = 8         # f32 vreg sublane depth (second-to-last dim)
D_CONST = 1.702
DEFAULT_BLOCK_ROWS = 2048   # (2048,128) f32 = 1 MiB/buffer; 5 ops x 2 bufs ~ 10 MiB
MIN_PALLAS_N = 1024         # below this, kernel launch/pad overhead dominates


def _irf_kernel(theta_ref, a_ref, b_ref, c_ref, out_ref):
    """Elementwise 3PL item-response function on one (block_rows, 128) tile."""
    theta = theta_ref[...]
    a = jnp.maximum(a_ref[...], 0.001)          # a.clamp_min(0.001)
    b = b_ref[...]
    c = jnp.clip(c_ref[...], 0.0, 1.0)          # c.clamp(0, 1)
    # 1 / (1 + exp(-D*a*(theta-b))) == 0.5 * (1 + tanh(0.5*D*a*(theta-b)))
    # -> one EUP tanh instead of an exp plus a multi-op VALU divide.
    sig = 0.5 * (1.0 + jnp.tanh((0.5 * D_CONST) * a * (theta - b)))
    out_ref[...] = c + (1.0 - c) * sig


def _irf_jnp(theta, a, b, c):
    """Plain-JAX IRF (small-batch fast path)."""
    a = jnp.maximum(a, 0.001)
    c = jnp.clip(c, 0.0, 1.0)
    return c + (1.0 - c) / (1.0 + jnp.exp(-D_CONST * a * (theta - b)))


def init_params(key, user_num, item_num):
    """Deterministic synthetic parameters matching IRTNet.__init__ shapes."""
    k_theta, k_a, k_b, k_c = jax.random.split(key, 4)
    # nn.Embedding default init: N(0, 1); a and c re-initialized uniform_(0,1).
    theta_w = jax.random.normal(k_theta, (user_num, 1), dtype=jnp.float32)
    b_w = jax.random.normal(k_b, (item_num, 1), dtype=jnp.float32)
    a_w = jax.random.uniform(k_a, (item_num, 1), dtype=jnp.float32)
    c_w = jax.random.uniform(k_c, (item_num, 1), dtype=jnp.float32)
    return {"theta": theta_w, "a": a_w, "b": b_w, "c": c_w}


def _round_up(x, m):
    return ((x + m - 1) // m) * m


@functools.partial(jax.jit, static_argnames=("block_rows",))
def irt_forward(params, user, item, *, block_rows=DEFAULT_BLOCK_ROWS):
    """IRTNet.forward: embedding lookups (glue) + Pallas IRF kernel."""
    # Glue: embedding gathers + squeeze(-1) -> (N,) each.
    theta = params["theta"][user, 0]
    a = params["a"][item, 0]
    b = params["b"][item, 0]
    c = params["c"][item, 0]

    n = theta.shape[0]
    if n < MIN_PALLAS_N:
        # Small-batch fast path: pad/launch overhead would dominate.
        return _irf_jnp(theta, a, b, c)

    # TODO(synk): fuse the four tiny embedding-table gathers into the kernel
    # (tables whole in VMEM + in-kernel jnp.take on int32 index tiles) once
    # dynamic table gather lowers reliably; kept in XLA glue for robustness.

    # Pad so rows is a multiple of 8 sublanes and of the block row count ->
    # every tile is a stack of full (8,128) vregs, unmasked loads/stores.
    rows = _round_up(pl.cdiv(n, LANES), SUBLANES)
    br = min(block_rows, rows)
    rows = _round_up(rows, br)
    p = rows * LANES
    pad = p - n

    def prep(x):
        return jnp.pad(x.astype(jnp.float32), (0, pad)).reshape(rows, LANES)

    theta_p, a_p, b_p, c_p = prep(theta), prep(a), prep(b), prep(c)

    spec = pl.BlockSpec((br, LANES), lambda i: (i, 0))
    out = pl.pallas_call(
        _irf_kernel,
        out_shape=jax.ShapeDtypeStruct((rows, LANES), jnp.float32),
        grid=(rows // br,),
        in_specs=[spec, spec, spec, spec],
        out_specs=spec,
        compiler_params=pltpu.CompilerParams(
            dimension_semantics=("parallel",)),   # lets v7x split rows across its 2 TCs
    )(theta_p, a_p, b_p, c_p)

    return out.reshape(p)[:n]


def _reference(params, user, item):
    theta = params["theta"][user, 0]
    a = jnp.maximum(params["a"][item, 0], 0.001)
    b = params["b"][item, 0]
    c = jnp.clip(params["c"][item, 0], 0.0, 1.0)
    return c + (1.0 - c) / (1.0 + jnp.exp(-D_CONST * a * (theta - b)))


if __name__ == "__main__":
    key = jax.random.PRNGKey(0)
    k_params, k_user, k_item, k_user_s, k_item_s = jax.random.split(key, 5)

    user_num, item_num = 64, 32
    params = init_params(k_params, user_num, item_num)

    # --- Pallas path: batch large enough to hit the kernel; deliberately not
    # a multiple of 1024 so the pad / unpad logic is exercised. ---
    batch = 3000
    user = jax.random.randint(k_user, (batch,), 0, user_num, dtype=jnp.int32)
    item = jax.random.randint(k_item, (batch,), 0, item_num, dtype=jnp.int32)

    out = jax.block_until_ready(irt_forward(params, user, item))
    ref = _reference(params, user, item)
    assert out.shape == (batch,)
    assert jnp.allclose(out, ref, atol=1e-5, rtol=1e-5), (out[:8], ref[:8])

    # --- Small-batch fast path (pure jnp, matches original tiny test). ---
    batch_s = 8
    user_s = jax.random.randint(k_user_s, (batch_s,), 0, user_num, dtype=jnp.int32)
    item_s = jax.random.randint(k_item_s, (batch_s,), 0, item_num, dtype=jnp.int32)

    out_s = jax.block_until_ready(irt_forward(params, user_s, item_s))
    ref_s = _reference(params, user_s, item_s)
    assert out_s.shape == (batch_s,)
    assert jnp.allclose(out_s, ref_s, atol=1e-5, rtol=1e-5), (out_s, ref_s)

    print("KERNEL_OK")
</pallas_src>

<mosaic_0001>
module attributes {stable_mosaic.version = 11 : i64} {
  func.func @_irf_kernel(%arg0: i32, %arg1: memref<24x128xf32, #tpu.memory_space<vmem>>, %arg2: memref<24x128xf32, #tpu.memory_space<vmem>>, %arg3: memref<24x128xf32, #tpu.memory_space<vmem>>, %arg4: memref<24x128xf32, #tpu.memory_space<vmem>>, %arg5: memref<24x128xf32, #tpu.memory_space<vmem>>) attributes {dimension_semantics = [#tpu.dimension_semantics<parallel>], iteration_bounds = array<i64: 1>, scalar_prefetch = 0 : i64, scratch_operands = 0 : i64, tpu.core_type = #tpu.core_type<tc>, window_params = [{transform_indices = @transform_0, window_bounds = array<i64: 24, 128>}, {transform_indices = @transform_1, window_bounds = array<i64: 24, 128>}, {transform_indices = @transform_2, window_bounds = array<i64: 24, 128>}, {transform_indices = @transform_3, window_bounds = array<i64: 24, 128>}, {transform_indices = @transform_4, window_bounds = array<i64: 24, 128>}]} {
    %c0 = arith.constant 0 : index
    %c0_0 = arith.constant 0 : index
    %0 = vector.load %arg1[%c0, %c0_0] : memref<24x128xf32, #tpu.memory_space<vmem>>, vector<24x128xf32>
    %c0_1 = arith.constant 0 : index
    %c0_2 = arith.constant 0 : index
    %1 = vector.load %arg2[%c0_1, %c0_2] : memref<24x128xf32, #tpu.memory_space<vmem>>, vector<24x128xf32>
    %cst = arith.constant 1.000000e-03 : f32
    %2 = vector.broadcast %cst : f32 to vector<24x128xf32>
    %3 = arith.maximumf %1, %2 : vector<24x128xf32>
    %c0_3 = arith.constant 0 : index
    %c0_4 = arith.constant 0 : index
    %4 = vector.load %arg3[%c0_3, %c0_4] : memref<24x128xf32, #tpu.memory_space<vmem>>, vector<24x128xf32>
    %c0_5 = arith.constant 0 : index
    %c0_6 = arith.constant 0 : index
    %5 = vector.load %arg4[%c0_5, %c0_6] : memref<24x128xf32, #tpu.memory_space<vmem>>, vector<24x128xf32>
    %cst_7 = arith.constant 0.000000e+00 : f32
    %cst_8 = arith.constant 1.000000e+00 : f32
    %6 = vector.broadcast %cst_7 : f32 to vector<24x128xf32>
    %7 = arith.maximumf %6, %5 : vector<24x128xf32>
    %8 = vector.broadcast %cst_8 : f32 to vector<24x128xf32>
    %9 = arith.minimumf %8, %7 : vector<24x128xf32>
    %cst_9 = arith.constant 8.510000e-01 : f32
    %10 = vector.broadcast %cst_9 : f32 to vector<24x128xf32>
    %11 = arith.mulf %10, %3 : vector<24x128xf32>
    %12 = arith.subf %0, %4 : vector<24x128xf32>
    %13 = arith.mulf %11, %12 : vector<24x128xf32>
    %14 = math.tanh %13 : vector<24x128xf32>
    %cst_10 = arith.constant 1.000000e+00 : f32
    %15 = vector.broadcast %cst_10 : f32 to vector<24x128xf32>
    %16 = arith.addf %15, %14 : vector<24x128xf32>
    %cst_11 = arith.constant 5.000000e-01 : f32
    %17 = vector.broadcast %cst_11 : f32 to vector<24x128xf32>
    %18 = arith.mulf %17, %16 : vector<24x128xf32>
    %cst_12 = arith.constant 1.000000e+00 : f32
    %19 = vector.broadcast %cst_12 : f32 to vector<24x128xf32>
    %20 = arith.subf %19, %9 : vector<24x128xf32>
    %21 = arith.mulf %20, %18 : vector<24x128xf32>
    %22 = arith.addf %9, %21 : vector<24x128xf32>
    %c0_13 = arith.constant 0 : index
    %c0_14 = arith.constant 0 : index
    %23 = vector.load %arg5[%c0_13, %c0_14] : memref<24x128xf32, #tpu.memory_space<vmem>>, vector<24x128xf32>
    tpu.vector_store %arg5[%c0_13, %c0_14], %22 {strides = array<i32>} : memref<24x128xf32, #tpu.memory_space<vmem>>, vector<24x128xf32>,
    return
  }
  func.func @transform_0(%arg0: i32) -> (i32, i32) {
    %c0_i32 = arith.constant 0 : i32
    %c0_i32_0 = arith.constant 0 : i32
    return %arg0, %c0_i32 : i32, i32
  }
  func.func @transform_1(%arg0: i32) -> (i32, i32) {
    %c0_i32 = arith.constant 0 : i32
    %c0_i32_0 = arith.constant 0 : i32
    return %arg0, %c0_i32 : i32, i32
  }
  func.func @transform_2(%arg0: i32) -> (i32, i32) {
    %c0_i32 = arith.constant 0 : i32
    %c0_i32_0 = arith.constant 0 : i32
    return %arg0, %c0_i32 : i32, i32
  }
  func.func @transform_3(%arg0: i32) -> (i32, i32) {
    %c0_i32 = arith.constant 0 : i32
    %c0_i32_0 = arith.constant 0 : i32
    return %arg0, %c0_i32 : i32, i32
  }
  func.func @transform_4(%arg0: i32) -> (i32, i32) {
    %c0_i32 = arith.constant 0 : i32
    %c0_i32_0 = arith.constant 0 : i32
    return %arg0, %c0_i32 : i32, i32
  }
}

</mosaic_0001>

<bundles_post_ra>
// kernel: irt_forward.1
= control target key start
LH: loop header
LB: loop body
LE: loop exit
PB: predicated region body
PF: predicated region fallthrough
CT: control target
= control target key end

     0   :  { %s183_s0 = inlined_call_operand.vmem [shape: f32[24,128], index: 0, kind: input, shape index: {}]   ;;  %s184_s1 = inlined_call_operand.vmem [shape: f32[24,128], index: 1, kind: input, shape index: {}]   ;;  %s185_s2 = inlined_call_operand.vmem [shape: f32[24,128], index: 2, kind: input, shape index: {}]   ;;  %s186_s3 = inlined_call_operand.vmem [shape: f32[24,128], index: 3, kind: input, shape index: {}]   ;;  %s187_s4 = inlined_call_operand.hbm [shape: f32[24,128], index: 4, kind: output, shape index: {}]  }
   0x1   :  { %v18_v0 = vld [vmem:[%s183_s0] sm:$0xff]  ;;  %v19_v5 = vld [vmem:[%s183_s0 + $0x8] sm:$0xff]  ;;  %v20_v9 = vld [vmem:[%s183_s0 + $0x10] sm:$0xff] }
   0x2   :  { %v21_v1 = vld [vmem:[%s184_s1] sm:$0xff]  ;;  %v22_v6 = vld [vmem:[%s184_s1 + $0x8] sm:$0xff]  ;;  %v23_v12 = vld [vmem:[%s184_s1 + $0x10] sm:$0xff] }
   0x3   :  { %v27_v2 = vld [vmem:[%s185_s2] sm:$0xff]  ;;  %v24_v3 = vmax.f32 %v21_v1, 0.001  ;;  %v25_v7 = vmax.f32 %v22_v6, 0.001  ;;  %v28_v8 = vld [vmem:[%s185_s2 + $0x8] sm:$0xff] }
   0x4   :  { %v42_v4 = vsub.f32 %v18_v0, %v27_v2  ;;  %v43_v11 = vsub.f32 %v19_v5, %v28_v8  ;;  %v29_v13 = vld [vmem:[%s185_s2 + $0x10] sm:$0xff]  ;;  %v26_v15 = vmax.f32 %v23_v12, 0.001 }
   0x5   :  { %v39_v10 = vmul.f32 0.851, %v24_v3  ;;  %v40_v14 = vmul.f32 0.851, %v25_v7  ;;  %v44_v17 = vsub.f32 %v20_v9, %v29_v13 }
   0x7   :  { %v45_v16 = vmul.f32 %v42_v4, %v39_v10 }
   0x8   :  { %9 = vsyncpa [#allocation3], 0  ;;  %v46_v18 = vmul.f32 %v43_v11, %v40_v14  ;;  %v41_v19 = vmul.f32 0.851, %v26_v15  ;;  %v30_v21 = vld [vmem:[%s186_s3] sm:$0xff]  ;;  %v31_v22 = vld [vmem:[%s186_s3 + $0x8] sm:$0xff] }
   0x9   :  { %88 = vtanh.f32 %v45_v16  ;;  %v33_v23 = vmax.f32 %v30_v21, 0.0  ;;  %v32_v24 = vld [vmem:[%s186_s3 + $0x10] sm:$0xff]  ;;  %v34_v25 = vmax.f32 %v31_v22, 0.0  ;;  %s116_s3 = smov [#allocation2]  }
   0xa   :  { %90 = vtanh.f32 %v46_v18  ;;  %v47_v20 = vmul.f32 %v44_v17, %v41_v19  ;;  %v35_v26 = vmax.f32 %v32_v24, 0.0  ;;  %s74_s10 = sshll.u32 %s116_s3, 4  ;;  %s75_s10 = int_to_ptr.vmem [resolvable:$true] %s74_s10 }
   0xb   :  { %v36_v27 = vmin.f32 %v33_v23, 1.0  ;;  %v37_v28 = vmin.f32 %v34_v25, 1.0  ;;  %s94_s11 = scalar_lea.vmem %s75_s10, 384  ;;  %p99_p1 = scmp.lt.s32.totalorder %s75_s10, %s75_s10 }
   0xc   :  { %92 = vtanh.f32 %v47_v20  ;;  %v38_v30 = vmin.f32 %v35_v26, 1.0  ;;  %p95_p0 = scmp.ne.s32.totalorder %s75_s10, %s94_s11  ;;  %p100_p2 = scmp.lt.s32.totalorder %s94_s11, %s94_s11 }
   0xd   :  { %v57_v33 = vsub.f32 1.0, %v36_v27  ;;  %v58_v35 = vsub.f32 1.0, %v37_v28 }
   0xe   :  { %v59_v40 = vsub.f32 1.0, %v38_v30  ;;  %p101_p3 = por %p100_p2, %p99_p1 }
  0x10   :  { %p102_p4 = pnand %p101_p3, %p95_p0 }
  0x16   :  { %v89_v29 = vpop.eup %88 }
  0x17   :  { %v91_v31 = vpop.eup %90  ;;  %v51_v32 = vadd.f32 1.0, %v89_v29 }
  0x18   :  { %v52_v34 = vadd.f32 1.0, %v91_v31 }
  0x19   :  { %v93_v36 = vpop.eup %92  ;;  %v54_v37 = vmul.f32 0.5, %v51_v32 }
  0x1a   :  { %v55_v38 = vmul.f32 0.5, %v52_v34  ;;  %v53_v39 = vadd.f32 1.0, %v93_v36 }
  0x1b   :  { %v60_v41 = vmul.f32 %v57_v33, %v54_v37 }
  0x1c   :  { %v61_v42 = vmul.f32 %v58_v35, %v55_v38  ;;  %v56_v43 = vmul.f32 0.5, %v53_v39 }
  0x1d   :  { %v63_v44 = vadd.f32 %v60_v41, %v36_v27 }
  0x1e   :  { %v64_v45 = vadd.f32 %v61_v42, %v37_v28  ;;  %v62_v46 = vmul.f32 %v59_v40, %v56_v43 }
  0x1f   :  { %66 = vst [vmem:[#allocation2] sm:$0xff] %v63_v44 }
  0x20   :  { %67 = vst [vmem:[#allocation2 + $0x8] sm:$0xff] %v64_v45  ;;  %v65_v47 = vadd.f32 %v62_v46, %v38_v30 }
  0x22   :  { %68 = vst [vmem:[#allocation2 + $0x10] sm:$0xff] %v65_v47 }
  0x23   :  { %105 = shalt.err (!%p102_p4)
}
  0x24   :  { %s117_s12 = smov 128   ;;  %s118_s13 = smov 8  }
  0x25   :  { %80 = dma.vmem_to_hbm [thread:$0]  %s75_s10, 384, %s187_s4, [#allocation3], %s117_s12, %s117_s12, %s118_s13  }
  0x26   :  { %114 = dma.done.wait [#allocation3], 384  }
  0x27   :  { %115 = vsyncadd [#allocation3], 4294966912 }
  0x28   :  { %84 = vsyncpa [#allocation3], 1 }

</bundles_post_ra>
